<compile_context>
chip_gen: v7x
topology: tpu7x:2x2x1
jax: 0.10.0
libtpu: 0.0.40
codegen_flags: <defaults>
</compile_context>

<pallas_src>
import jax
import jax.numpy as jnp
from jax.experimental import pallas as pl
from jax.experimental.pallas import tpu as pltpu


def policy_net_kernel(xT_ref, w1_ref, b1_ref, w2_ref, b2_ref, outT_ref):
    # Batch-on-lanes layout: every tensor is [features, batch_tile].
    xT = xT_ref[...]                                                        # (S, TB)
    hT = jnp.dot(w1_ref[...], xT, preferred_element_type=jnp.float32)      # (H, TB)  MXU
    hT = jnp.maximum(hT + b1_ref[...], 0.0)                                 # bias + ReLU (VPU)
    logitsT = jnp.dot(w2_ref[...], hT, preferred_element_type=jnp.float32)  # (A, TB)  MXU
    logitsT = logitsT + b2_ref[...]
    # Numerically stable softmax over the action axis (sublane axis, only 8 rows -> cheap).
    m = jnp.max(logitsT, axis=0, keepdims=True)                             # (1, TB)
    e = jnp.exp(logitsT - m)                                                # EUP
    denom = jnp.sum(e, axis=0, keepdims=True)                               # (1, TB)
    outT_ref[...] = (e / denom).astype(outT_ref.dtype)                      # lane-dense store


def _choose_batch_tile(batch, block_batch):
    """Pick the batch tile (lane dim of every block).

    - Small batches: one full-extent block (block dim == array dim satisfies the
      (8,128) constraint; per-step overhead is irrelevant at this size).
    - Large batches: a multiple of 128 (lane-dense, unmasked vld/vst), capped by
      block_batch, and capped so the grid has >= 2 steps (lets the "parallel"
      batch axis shard across both TensorCores on v7x).
    """
    if batch <= 256:
        return batch
    half = -(-batch // 2)                        # cdiv(batch, 2)
    tb = ((half + 127) // 128) * 128             # round up to a lane multiple
    return min(block_batch, tb)


def policy_net_forward(x, w1, b1, w2, b2, *, block_batch=1024):
    """fc1 -> ReLU -> fc2 -> softmax(dim=1).

    x:  [batch, state_dim]
    w1: [hidden_dim, state_dim]   (torch.nn.Linear weight layout)
    b1: [hidden_dim]
    w2: [action_dim, hidden_dim]
    b2: [action_dim]
    returns probs [batch, action_dim]
    """
    batch, state_dim = x.shape
    hidden_dim = w1.shape[0]
    action_dim = w2.shape[0]

    tb = _choose_batch_tile(batch, block_batch)
    grid_b = pl.cdiv(batch, tb)

    # Batch-on-lanes: present the batch as the last (lane) dim to the kernel.
    xT = x.T                                     # (state_dim, batch)
    b1c = b1.reshape(hidden_dim, 1)
    b2c = b2.reshape(action_dim, 1)

    cost = pl.CostEstimate(
        flops=2 * batch * (state_dim * hidden_dim + hidden_dim * action_dim),
        transcendentals=batch * action_dim,
        bytes_accessed=4 * (batch * (state_dim + action_dim)
                            + state_dim * hidden_dim + hidden_dim * action_dim
                            + hidden_dim + action_dim),
    )

    outT = pl.pallas_call(
        policy_net_kernel,
        out_shape=jax.ShapeDtypeStruct((action_dim, batch), jnp.float32),
        grid=(grid_b,),
        in_specs=[
            pl.BlockSpec((state_dim, tb), lambda i: (0, i)),            # xT: tiled on lanes
            pl.BlockSpec((hidden_dim, state_dim), lambda i: (0, 0)),    # w1: VMEM-resident
            pl.BlockSpec((hidden_dim, 1), lambda i: (0, 0)),            # b1: VMEM-resident
            pl.BlockSpec((action_dim, hidden_dim), lambda i: (0, 0)),   # w2: VMEM-resident
            pl.BlockSpec((action_dim, 1), lambda i: (0, 0)),            # b2: VMEM-resident
        ],
        out_specs=pl.BlockSpec((action_dim, tb), lambda i: (0, i)),     # lane-dense output
        compiler_params=pltpu.CompilerParams(
            dimension_semantics=("parallel",),
        ),
        cost_estimate=cost,
    )(xT, w1, b1c, w2, b2c)

    return outT.T                                # back to [batch, action_dim]


def init_params(key, state_dim, hidden_dim, action_dim):
    # torch.nn.Linear default init: U(-1/sqrt(fan_in), 1/sqrt(fan_in)), weight [out, in].
    k1, k2, k3, k4 = jax.random.split(key, 4)
    bound1 = 1.0 / jnp.sqrt(jnp.float32(state_dim))
    bound2 = 1.0 / jnp.sqrt(jnp.float32(hidden_dim))
    w1 = jax.random.uniform(k1, (hidden_dim, state_dim), jnp.float32, -bound1, bound1)
    b1 = jax.random.uniform(k2, (hidden_dim,), jnp.float32, -bound1, bound1)
    w2 = jax.random.uniform(k3, (action_dim, hidden_dim), jnp.float32, -bound2, bound2)
    b2 = jax.random.uniform(k4, (action_dim,), jnp.float32, -bound2, bound2)
    return w1, b1, w2, b2


if __name__ == "__main__":
    state_dim, hidden_dim, action_dim = 4, 128, 8
    batch = 2

    key = jax.random.PRNGKey(0)
    key_x, key_p = jax.random.split(key)
    x = jax.random.normal(key_x, (batch, state_dim), jnp.float32)
    w1, b1, w2, b2 = init_params(key_p, state_dim, hidden_dim, action_dim)

    def ref_fwd(xv):
        h = jnp.maximum(xv @ w1.T + b1, 0.0)
        return jax.nn.softmax(h @ w2.T + b2, axis=1)

    probs = jax.block_until_ready(policy_net_forward(x, w1, b1, w2, b2))
    probs_ref = ref_fwd(x)
    assert probs.shape == (batch, action_dim)
    assert jnp.allclose(probs, probs_ref, atol=1e-5, rtol=1e-5)
    assert jnp.allclose(jnp.sum(probs, axis=1), 1.0, atol=1e-5)

    # Multi-tile grid: batch spans 2 lane-dense tiles (exercises the pipelined /
    # megacore-shardable path with tb=256, grid=(2,)).
    big_batch = 512
    xb = jax.random.normal(key_x, (big_batch, state_dim), jnp.float32)
    probs_big = jax.block_until_ready(policy_net_forward(xb, w1, b1, w2, b2))
    assert probs_big.shape == (big_batch, action_dim)
    assert jnp.allclose(probs_big, ref_fwd(xb), atol=1e-5, rtol=1e-5)

    print("KERNEL_OK")
</pallas_src>

<mosaic_0001>
module attributes {stable_mosaic.version = 11 : i64} {
  func.func @policy_net_kernel(%arg0: i32, %arg1: memref<4x2xf32, #tpu.memory_space<vmem>>, %arg2: memref<128x4xf32, #tpu.memory_space<vmem>>, %arg3: memref<128x1xf32, #tpu.memory_space<vmem>>, %arg4: memref<8x128xf32, #tpu.memory_space<vmem>>, %arg5: memref<8x1xf32, #tpu.memory_space<vmem>>, %arg6: memref<8x2xf32, #tpu.memory_space<vmem>>) attributes {dimension_semantics = [#tpu.dimension_semantics<parallel>], iteration_bounds = array<i64: 1>, scalar_prefetch = 0 : i64, scratch_operands = 0 : i64, tpu.core_type = #tpu.core_type<tc>, window_params = [{transform_indices = @transform_0, window_bounds = array<i64: 4, 2>}, {pipeline_mode = #tpu.pipeline_mode<synchronous>, transform_indices = @transform_1, window_bounds = array<i64: 128, 4>}, {pipeline_mode = #tpu.pipeline_mode<synchronous>, transform_indices = @transform_2, window_bounds = array<i64: 128, 1>}, {pipeline_mode = #tpu.pipeline_mode<synchronous>, transform_indices = @transform_3, window_bounds = array<i64: 8, 128>}, {pipeline_mode = #tpu.pipeline_mode<synchronous>, transform_indices = @transform_4, window_bounds = array<i64: 8, 1>}, {transform_indices = @transform_5, window_bounds = array<i64: 8, 2>}]} {
    %c0 = arith.constant 0 : index
    %c0_0 = arith.constant 0 : index
    %0 = vector.load %arg1[%c0, %c0_0] : memref<4x2xf32, #tpu.memory_space<vmem>>, vector<4x2xf32>
    %c0_1 = arith.constant 0 : index
    %c0_2 = arith.constant 0 : index
    %1 = vector.load %arg2[%c0_1, %c0_2] : memref<128x4xf32, #tpu.memory_space<vmem>>, vector<128x4xf32>
    %cst = arith.constant dense<0.000000e+00> : vector<128x2xf32>
    %2 = tpu.matmul %1, %0, %cst {dimension_numbers = #tpu.dot_dimension_numbers<[1], [0], [0], [1], [0, 0, 1, 1], [], []>} : vector<128x4xf32>, vector<4x2xf32>, vector<128x2xf32> -> vector<128x2xf32>
    %c0_3 = arith.constant 0 : index
    %c0_4 = arith.constant 0 : index
    %3 = vector.load %arg3[%c0_3, %c0_4] : memref<128x1xf32, #tpu.memory_space<vmem>>, vector<128x1xf32>
    %4 = vector.broadcast %3 : vector<128x1xf32> to vector<128x2xf32>
    %5 = arith.addf %2, %4 : vector<128x2xf32>
    %cst_5 = arith.constant 0.000000e+00 : f32
    %6 = vector.broadcast %cst_5 : f32 to vector<128x2xf32>
    %7 = arith.maximumf %5, %6 : vector<128x2xf32>
    %c0_6 = arith.constant 0 : index
    %c0_7 = arith.constant 0 : index
    %8 = vector.load %arg4[%c0_6, %c0_7] : memref<8x128xf32, #tpu.memory_space<vmem>>, vector<8x128xf32>
    %cst_8 = arith.constant dense<0.000000e+00> : vector<8x2xf32>
    %9 = tpu.matmul %8, %7, %cst_8 {dimension_numbers = #tpu.dot_dimension_numbers<[1], [0], [0], [1], [0, 0, 1, 1], [], []>} : vector<8x128xf32>, vector<128x2xf32>, vector<8x2xf32> -> vector<8x2xf32>
    %c0_9 = arith.constant 0 : index
    %c0_10 = arith.constant 0 : index
    %10 = vector.load %arg5[%c0_9, %c0_10] : memref<8x1xf32, #tpu.memory_space<vmem>>, vector<8x1xf32>
    %11 = vector.broadcast %10 : vector<8x1xf32> to vector<8x2xf32>
    %12 = arith.addf %9, %11 : vector<8x2xf32>
    %cst_11 = arith.constant dense<0xFF800000> : vector<2xf32>
    %13 = vector.multi_reduction <maximumf>, %12, %cst_11 [0] : vector<8x2xf32> to vector<2xf32>
    %14 = vector.shape_cast %13 : vector<2xf32> to vector<1x2xf32>
    %15 = vector.broadcast %14 : vector<1x2xf32> to vector<8x2xf32>
    %16 = arith.subf %12, %15 : vector<8x2xf32>
    %17 = math.exp %16 : vector<8x2xf32>
    %cst_12 = arith.constant dense<0.000000e+00> : vector<2xf32>
    %18 = vector.multi_reduction <add>, %17, %cst_12 [0] : vector<8x2xf32> to vector<2xf32>
    %19 = vector.shape_cast %18 : vector<2xf32> to vector<1x2xf32>
    %20 = vector.broadcast %19 : vector<1x2xf32> to vector<8x2xf32>
    %21 = arith.divf %17, %20 : vector<8x2xf32>
    %c0_13 = arith.constant 0 : index
    %c0_14 = arith.constant 0 : index
    %22 = vector.load %arg6[%c0_13, %c0_14] : memref<8x2xf32, #tpu.memory_space<vmem>>, vector<8x2xf32>
    tpu.vector_store %arg6[%c0_13, %c0_14], %21 {strides = array<i32>} : memref<8x2xf32, #tpu.memory_space<vmem>>, vector<8x2xf32>,
    return
  }
  func.func @transform_0(%arg0: i32) -> (i32, i32) {
    %c0_i32 = arith.constant 0 : i32
    %c0_i32_0 = arith.constant 0 : i32
    return %c0_i32, %arg0 : i32, i32
  }
  func.func @transform_1(%arg0: i32) -> (i32, i32) {
    %c0_i32 = arith.constant 0 : i32
    %c0_i32_0 = arith.constant 0 : i32
    %c0_i32_1 = arith.constant 0 : i32
    return %c0_i32, %c0_i32_0 : i32, i32
  }
  func.func @transform_2(%arg0: i32) -> (i32, i32) {
    %c0_i32 = arith.constant 0 : i32
    %c0_i32_0 = arith.constant 0 : i32
    %c0_i32_1 = arith.constant 0 : i32
    return %c0_i32, %c0_i32_0 : i32, i32
  }
  func.func @transform_3(%arg0: i32) -> (i32, i32) {
    %c0_i32 = arith.constant 0 : i32
    %c0_i32_0 = arith.constant 0 : i32
    %c0_i32_1 = arith.constant 0 : i32
    return %c0_i32, %c0_i32_0 : i32, i32
  }
  func.func @transform_4(%arg0: i32) -> (i32, i32) {
    %c0_i32 = arith.constant 0 : i32
    %c0_i32_0 = arith.constant 0 : i32
    %c0_i32_1 = arith.constant 0 : i32
    return %c0_i32, %c0_i32_0 : i32, i32
  }
  func.func @transform_5(%arg0: i32) -> (i32, i32) {
    %c0_i32 = arith.constant 0 : i32
    %c0_i32_0 = arith.constant 0 : i32
    return %c0_i32, %arg0 : i32, i32
  }
}

</mosaic_0001>

<bundles_post_ra>
// kernel: tpu_custom_call.1
= control target key start
LH: loop header
LB: loop body
LE: loop exit
PB: predicated region body
PF: predicated region fallthrough
CT: control target
= control target key end

     0   :  { %vm182_vm0 = vcmask 1043456   ;;  %vm133_vm1 = vcmask 31744   ;;  %v595_v3 = vmov 0   ;;  %v596_v35 = vmov 0.0|0.0   ;;  %s764_s0 = inlined_call_operand.vmem [shape: f32[4,2], index: 0, kind: input, shape index: {}]   ;;  %s765_s1 = inlined_call_operand.vmem [shape: f32[128,4], index: 1, kind: input, shape index: {}]   ;;  %s766_s2 = inlined_call_operand.vmem [shape: f32[128,1], index: 2, kind: input, shape index: {}]   ;;  %s767_s4 = inlined_call_operand.vmem [shape: f32[8,1], index: 4, kind: input, shape index: {}]   ;;  %s768_s3 = inlined_call_operand.vmem [shape: f32[8,128], index: 3, kind: input, shape index: {}]   ;;  %s769_s5 = inlined_call_operand.vmem [shape: f32[8,2], index: 5, kind: output, shape index: {}]  }
   0x1   :  { %v20_v0 = vld [vmem:[%s764_s0] sm:$0xf]  ;;  %v22_v2 = vld [vmem:[%s765_s1 + $0x8] sm:$0xff]  ;;  %589 = vset.pattern.permute.xlu0 %v595_v3  ;;  %590 = vset.pattern.permute.xlu1 %v595_v3  ;;  %v23_v4 = vld [vmem:[%s765_s1 + $0x10] sm:$0xff]  ;;  %vm597_vm2 = vmmov 0   ;;  %v598_v36 = vmov 0.0  }
   0x2   :  { %v21_v1 = vld [vmem:[%s765_s1] sm:$0xff]  ;;  %500 = vmatprep.subr.msk.mxu0 %vm182_vm0, %v20_v0  ;;  %v24_v5 = vld [vmem:[%s765_s1 + $0x18] sm:$0xff]  ;;  %v39_v8 = vld [vmem:[%s766_s2 + $0x10] sm:$0xff]  ;;  %561 = vmatprep.subr.bf16.mxu1 %v596_v35  ;;  %vm424_vm3 = vcmask 15360  }
   0x3   :  { %502 = vmatprep.mubr.msk.f32.mxu0 %vm133_vm1, %v21_v1  ;;  %501 = vmatpush3.msk.msra.mxu0 %vm182_vm0, %v20_v0  ;;  %v25_v6 = vld [vmem:[%s765_s1 + $0x20] sm:$0xff]  ;;  %v38_v9 = vld [vmem:[%s766_s2 + $0x8] sm:$0xff]  ;;  %v40_v11 = vld [vmem:[%s766_s2 + $0x18] sm:$0xff] }
   0x4   :  { %503 = vmatmul.mubr.msk.f32.vlgmr.msra.gmra.mrb[0].mxu0 %vm133_vm1, %v22_v2  ;;  %v37_v7 = vld [vmem:[%s766_s2] sm:$0xff]  ;;  %65 = vperm.xlu1 %590, %v39_v8   ;;  %v26_v10 = vld [vmem:[%s765_s1 + $0x28] sm:$0xff]  ;;  %v27_v12 = vld [vmem:[%s765_s1 + $0x30] sm:$0xff] }
   0x5   :  { %505 = vmatprep.mubr.msk.f32.mxu0 %vm133_vm1, %v23_v4  ;;  %55 = vperm.xlu0 %589, %v37_v7   ;;  %v41_v13 = vld [vmem:[%s766_s2 + $0x20] sm:$0xff]  ;;  %v28_v14 = vld [vmem:[%s765_s1 + $0x38] sm:$0xff]  ;;  %v42_v15 = vld [vmem:[%s766_s2 + $0x28] sm:$0xff] }
   0x6   :  { %v29_v16 = vld [vmem:[%s765_s1 + $0x40] sm:$0xff]  ;;  %v43_v17 = vld [vmem:[%s766_s2 + $0x30] sm:$0xff]  ;;  %v30_v18 = vld [vmem:[%s765_s1 + $0x48] sm:$0xff]  ;;  %558 = vmatprep.mubr.msk.f32.mxu1 %vm597_vm2, %v598_v36 }
   0x7   :  { %v44_v19 = vld [vmem:[%s766_s2 + $0x38] sm:$0xff]  ;;  %v31_v20 = vld [vmem:[%s765_s1 + $0x50] sm:$0xff]  ;;  %v45_v21 = vld [vmem:[%s766_s2 + $0x40] sm:$0xff] }
   0x8   :  { %506 = vmatmul.mubr.msk.f32.gmra.mrb[2].mxu0 %vm133_vm1, %v24_v5  ;;  %70 = vperm.xlu1 %590, %v40_v11   ;;  %v32_v22 = vld [vmem:[%s765_s1 + $0x58] sm:$0xff]  ;;  %v46_v23 = vld [vmem:[%s766_s2 + $0x48] sm:$0xff]  ;;  %v33_v24 = vld [vmem:[%s765_s1 + $0x60] sm:$0xff] }
   0x9   :  { %508 = vmatprep.mubr.msk.f32.mxu0 %vm133_vm1, %v25_v6  ;;  %60 = vperm.xlu0 %589, %v38_v9   ;;  %v47_v25 = vld [vmem:[%s766_s2 + $0x50] sm:$0xff]  ;;  %v34_v26 = vld [vmem:[%s765_s1 + $0x68] sm:$0xff]  ;;  %v48_v27 = vld [vmem:[%s766_s2 + $0x58] sm:$0xff] }
   0xa   :  { %v35_v28 = vld [vmem:[%s765_s1 + $0x70] sm:$0xff]  ;;  %v49_v29 = vld [vmem:[%s766_s2 + $0x60] sm:$0xff]  ;;  %v36_v30 = vld [vmem:[%s765_s1 + $0x78] sm:$0xff] }
   0xb   :  { %v50_v31 = vld [vmem:[%s766_s2 + $0x68] sm:$0xff]  ;;  %v51_v32 = vld [vmem:[%s766_s2 + $0x70] sm:$0xff]  ;;  %v52_v33 = vld [vmem:[%s766_s2 + $0x78] sm:$0xff] }
   0xc   :  { %509 = vmatmul.mubr.msk.f32.gmra.mrb[4].mxu0 %vm133_vm1, %v26_v10  ;;  %80 = vperm.xlu1 %590, %v42_v15   ;;  %v348_v34 = vld [vmem:[%s767_s4] sm:$0xff] }
   0xd   :  { %511 = vmatprep.mubr.msk.f32.mxu0 %vm133_vm1, %v27_v12  ;;  %75 = vperm.xlu0 %589, %v41_v13  }
  0x10   :  { %512 = vmatmul.mubr.msk.f32.gmra.mrb[6].mxu0 %vm133_vm1, %v28_v14  ;;  %90 = vperm.xlu1 %590, %v44_v19  }
  0x11   :  { %514 = vmatprep.mubr.msk.f32.mxu0 %vm133_vm1, %v29_v16  ;;  %85 = vperm.xlu0 %589, %v43_v17  }
  0x14   :  { %515 = vmatmul.mubr.msk.f32.gmra.mrb[8].mxu0 %vm133_vm1, %v30_v18  ;;  %100 = vperm.xlu1 %590, %v46_v23  }
  0x15   :  { %517 = vmatprep.mubr.msk.f32.mxu0 %vm133_vm1, %v31_v20  ;;  %95 = vperm.xlu0 %589, %v45_v21  }
  0x18   :  { %518 = vmatmul.mubr.msk.f32.gmra.mrb[10].mxu0 %vm133_vm1, %v32_v22  ;;  %110 = vperm.xlu1 %590, %v48_v27  }
  0x19   :  { %520 = vmatprep.mubr.msk.f32.mxu0 %vm133_vm1, %v33_v24  ;;  %105 = vperm.xlu0 %589, %v47_v25  }
  0x1c   :  { %521 = vmatmul.mubr.msk.f32.gmra.mrb[12].mxu0 %vm133_vm1, %v34_v26  ;;  %120 = vperm.xlu1 %590, %v50_v31  }
  0x1d   :  { %523 = vmatprep.mubr.msk.f32.mxu0 %vm133_vm1, %v35_v28  ;;  %115 = vperm.xlu0 %589, %v49_v29  }
  0x20   :  { %524 = vmatmul.mubr.msk.f32.gmra.mrb[14].mxu0 %vm133_vm1, %v36_v30  ;;  %130 = vperm.xlu1 %590, %v52_v33  }
  0x21   :  { %125 = vperm.xlu0 %589, %v51_v32  }
  0x25   :  { %351 = vperm.xlu0 %589, %v348_v34  }
  0x83   :  { %v66_v37 = vpop.permute.xlu1 %65 }
  0x84   :  { %v56_v38 = vpop.permute.xlu0 %55 }
  0x87   :  { %v71_v39 = vpop.permute.xlu1 %70 }
  0x88   :  { %v61_v40 = vpop.permute.xlu0 %60 }
  0x8b   :  { %v81_v41 = vpop.permute.xlu1 %80 }
  0x8c   :  { %v76_v42 = vpop.permute.xlu0 %75 }
  0x8f   :  { %v91_v48 = vpop.permute.xlu1 %90 }
  0x90   :  { %v86_v51 = vpop.permute.xlu0 %85 }
  0x93   :  { %v101_v61 = vpop.permute.xlu1 %100 }
  0x94   :  { %v96_v0 = vpop.permute.xlu0 %95 }
  0x97   :  { %v111_v9 = vpop.permute.xlu1 %110 }
  0x98   :  { %v106_v12 = vpop.permute.xlu0 %105 }
  0x9b   :  { %v121_v22 = vpop.permute.xlu1 %120 }
  0x9c   :  { %v116_v25 = vpop.permute.xlu0 %115 }
  0x9f   :  { %v131_v34 = vpop.permute.xlu1 %130 }
  0xd7   :  { %v504_v43 = vpop.f32.mrb[0].mxu0 }
  0xd8   :  { %v258_v44 = vadd.f32 %v504_v43, %v61_v40  ;;  %v252_v45 = vpop.f32.mrb[1].mxu0 }
  0xd9   :  { %v253_v46 = vadd.f32 %v252_v45, %v56_v38  ;;  %v126_v38 = vpop.permute.xlu0 %125 }
  0xda   :  { %v332_v47 = vmax.f32 %v258_v44, 0.0 }
  0xdb   :  { %v331_v49 = vmax.f32 %v253_v46, 0.0  ;;  %v507_v50 = vpop.f32.mrb[2].mxu0  ;;  %v347_v46 = vld [vmem:[%s768_s3] sm:$0xff] }
  0xdc   :  { %v268_v52 = vadd.f32 %v507_v50, %v71_v39  ;;  %v262_v53 = vpop.f32.mrb[3].mxu0 }
  0xdd   :  { %v263_v54 = vadd.f32 %v262_v53, %v66_v37  ;;  %v562_v55 = vpack.c.bf16 %v332_v47, %v331_v49  ;;  %v352_v47 = vpop.permute.xlu0 %351 }
  0xde   :  { %v334_v56 = vmax.f32 %v268_v52, 0.0 }
  0xdf   :  { %v333_v57 = vmax.f32 %v263_v54, 0.0  ;;  %v510_v58 = vpop.f32.mrb[4].mxu0  ;;  %563 = vmatpush3.bf16.msra.mxu1 %v562_v55 }
  0xe0   :  { %v278_v59 = vadd.f32 %v510_v58, %v81_v41  ;;  %v272_v60 = vpop.f32.mrb[5].mxu0  ;;  %564 = vmatprep.subr.bf16.mxu1 %v596_v35 }
  0xe1   :  { %v565_v62 = vpack.c.bf16 %v334_v56, %v333_v57  ;;  %v273_v63 = vadd.f32 %v272_v60, %v76_v42 }
  0xe2   :  { %v336_v1 = vmax.f32 %v278_v59, 0.0 }
  0xe3   :  { %v335_v2 = vmax.f32 %v273_v63, 0.0  ;;  %v513_v3 = vpop.f32.mrb[6].mxu0  ;;  %566 = vmatpush3.bf16.msra.mxu1 %v565_v62 }
  0xe4   :  { %v288_v4 = vadd.f32 %v513_v3, %v91_v48  ;;  %v282_v5 = vpop.f32.mrb[7].mxu0  ;;  %567 = vmatprep.subr.bf16.mxu1 %v596_v35 }
  0xe5   :  { %v568_v6 = vpack.c.bf16 %v336_v1, %v335_v2  ;;  %v283_v7 = vadd.f32 %v282_v5, %v86_v51 }
  0xe6   :  { %v338_v8 = vmax.f32 %v288_v4, 0.0 }
  0xe7   :  { %v337_v10 = vmax.f32 %v283_v7, 0.0  ;;  %v516_v11 = vpop.f32.mrb[8].mxu0  ;;  %569 = vmatpush3.bf16.msra.mxu1 %v568_v6 }
  0xe8   :  { %v298_v13 = vadd.f32 %v516_v11, %v101_v61  ;;  %v292_v14 = vpop.f32.mrb[9].mxu0  ;;  %570 = vmatprep.subr.bf16.mxu1 %v596_v35 }
  0xe9   :  { %v571_v15 = vpack.c.bf16 %v338_v8, %v337_v10  ;;  %v293_v16 = vadd.f32 %v292_v14, %v96_v0 }
  0xea   :  { %v340_v17 = vmax.f32 %v298_v13, 0.0 }
  0xeb   :  { %v339_v18 = vmax.f32 %v293_v16, 0.0  ;;  %v519_v19 = vpop.f32.mrb[10].mxu0  ;;  %572 = vmatpush3.bf16.msra.mxu1 %v571_v15 }
  0xec   :  { %v308_v20 = vadd.f32 %v519_v19, %v111_v9  ;;  %v302_v21 = vpop.f32.mrb[11].mxu0  ;;  %573 = vmatprep.subr.bf16.mxu1 %v596_v35 }
  0xed   :  { %v574_v23 = vpack.c.bf16 %v340_v17, %v339_v18  ;;  %v303_v24 = vadd.f32 %v302_v21, %v106_v12 }
  0xee   :  { %v342_v26 = vmax.f32 %v308_v20, 0.0 }
  0xef   :  { %v341_v27 = vmax.f32 %v303_v24, 0.0  ;;  %v522_v28 = vpop.f32.mrb[12].mxu0  ;;  %575 = vmatpush3.bf16.msra.mxu1 %v574_v23 }
  0xf0   :  { %v318_v29 = vadd.f32 %v522_v28, %v121_v22  ;;  %v312_v30 = vpop.f32.mrb[13].mxu0  ;;  %576 = vmatprep.subr.bf16.mxu1 %v596_v35 }
  0xf1   :  { %v577_v31 = vpack.c.bf16 %v342_v26, %v341_v27  ;;  %v313_v32 = vadd.f32 %v312_v30, %v116_v25 }
  0xf2   :  { %v344_v33 = vmax.f32 %v318_v29, 0.0 }
  0xf3   :  { %v343_v36 = vmax.f32 %v313_v32, 0.0  ;;  %v525_v37 = vpop.f32.mrb[14].mxu0  ;;  %578 = vmatpush3.bf16.msra.mxu1 %v577_v31 }
  0xf4   :  { %v328_v39 = vadd.f32 %v525_v37, %v131_v34  ;;  %v322_v40 = vpop.f32.mrb[15].mxu0  ;;  %579 = vmatprep.subr.bf16.mxu1 %v596_v35 }
  0xf5   :  { %v580_v41 = vpack.c.bf16 %v344_v33, %v343_v36  ;;  %v323_v42 = vadd.f32 %v322_v40, %v126_v38 }
  0xf6   :  { %v346_v43 = vmax.f32 %v328_v39, 0.0 }
  0xf7   :  { %v345_v44 = vmax.f32 %v323_v42, 0.0  ;;  %581 = vmatpush3.bf16.msra.mxu1 %v580_v41 }
  0xf8   :  { %582 = vmatprep.subr.bf16.mxu1 %v596_v35 }
  0xf9   :  { %v583_v45 = vpack.c.bf16 %v346_v43, %v345_v44 }
  0xfb   :  { %584 = vmatpush3.bf16.msra.mxu1 %v583_v45 }
  0xfe   :  { %559 = vmatmul.mubr.f32.vlgmr.msra.gmra.mrb[0].mxu1 %v347_v46 }
 0x1d1   :  { %v420_v48 = vpop.f32.mrb[0].mxu1 }
 0x1d2   :  { %v421_v49 = vadd.f32 %v420_v48, %v352_v47  ;;  %v560_v50 = vpop.f32.mrb[1].mxu1 }
 0x1d4   :  { %v425_v51 = vsel %vm424_vm3, %v421_v49, -inf }
 0x1d5   :  { %v426_v52 = vrot.slane %v425_v51, 4 }
 0x1d7   :  { %v427_v53 = vmax.f32 %v425_v51, %v426_v52 }
 0x1d9   :  { %v428_v54 = vrot.slane %v427_v53, 2 }
 0x1db   :  { %v429_v55 = vmax.f32 %v427_v53, %v428_v54 }
 0x1dd   :  { %v430_v56 = vrot.slane %v429_v55, 1 }
 0x1df   :  { %v431_v35 = vmax.f32 %v429_v55, %v430_v56 }
 0x1e1   :  { %v432_v57 = vsub.f32 %v421_v49, %v431_v35 }
 0x1e3   :  { %v433_v58 = vmul.f32 1.442695, %v432_v57 }
 0x1e5   :  { %591 = vpow2.f32 %v433_v58 }
 0x1ef   :  { %v592_v59 = vpop.eup %591 }
 0x1f0   :  { %v435_v60 = vsel %vm424_vm3, %v592_v59, 0.0 }
 0x1f1   :  { %v436_v61 = vrot.slane %v435_v60, 4 }
 0x1f3   :  { %v437_v62 = vadd.f32 %v436_v61, %v435_v60 }
 0x1f5   :  { %v438_v63 = vrot.slane %v437_v62, 2 }
 0x1f7   :  { %v439_v0 = vadd.f32 %v438_v63, %v437_v62 }
 0x1f9   :  { %v440_v1 = vrot.slane %v439_v0, 1 }
 0x1fb   :  { %v441_v2 = vadd.f32 %v440_v1, %v439_v0 }
 0x1fd   :  { %593 = vrcp.f32 %v441_v2 }
 0x207   :  { %v594_v3 = vpop.eup %593 }
 0x208   :  { %v443_v4 = vmul.f32 %v594_v3, %v592_v59 }
 0x20a   :  { %444 = vst.msk [vmem:[%s769_s5] sm:$0xff] %vm424_vm3, %v443_v4 }

</bundles_post_ra>
